<compile_context>
chip_gen: v5e
topology: v5e:2x2
jax: 0.10.0
libtpu: 0.0.40
codegen_flags: <defaults>
</compile_context>

<pallas_src>
import functools
import math
import operator

import jax
import jax.numpy as jnp
from jax.experimental import pallas as pl
from jax.experimental.pallas import tpu as pltpu

_LANE = 128
_SUBLANE = 8
_TILE_TARGET_BYTES = 2 * 1024 * 1024      # ~2 MiB per-input tile: pipeline overhead <5% of DMA time
_MIN_KERNEL_BYTES = 128 * 1024            # below this, plain fused XLA adds beat a kernel launch
_LANE_WIDTH_CANDIDATES = (2048, 1024, 512, 256, 128)


def _get_mask(sampled, total):
    """Same semantics as the torch helper; returns a jnp bool multi-hot vector."""
    multihot = [
        i == sampled or (isinstance(sampled, list) and i in sampled)
        for i in range(total)
    ]
    return jnp.asarray(multihot, dtype=jnp.bool_)


def _physical_vmem_bytes():
    try:
        return int(pltpu.get_tpu_info().vmem_capacity_bytes)
    except Exception:
        return 64 * 1024 * 1024   # conservative lower bound (v7x per-TensorCore VMEM)


def _round_up(x, m):
    return -(-x // m) * m


def _make_sum_kernel(n_sel, acc_dtype):
    """Kernel summing `n_sel` resident VMEM tiles into the output tile."""

    def kernel(*refs):
        # refs[:-1] are the selected candidate tiles, refs[-1] is the output tile.
        o_ref = refs[-1]
        acc = refs[0][...].astype(acc_dtype)
        for r in refs[1:-1]:
            acc = acc + r[...].astype(acc_dtype)
        o_ref[...] = acc.astype(o_ref.dtype)

    return kernel


def path_sampling_input_choice(input_tensors, sampled, *,
                               min_kernel_bytes=_MIN_KERNEL_BYTES):
    """input_tensors: list of same-shaped arrays; sampled: Python int or list[int]."""
    if not isinstance(sampled, list):
        # int-sampled: pure passthrough, zero extra HBM traffic.
        return input_tensors[sampled]

    selected = [input_tensors[t] for t in sampled]
    n_sel = len(selected)
    if n_sel == 0:
        return 0
    if n_sel == 1:
        # sum of a single tensor == that tensor; skip the kernel launch.
        return selected[0]

    orig_shape = selected[0].shape
    out_dtype = jnp.result_type(*[x.dtype for x in selected])
    total = math.prod(orig_shape)
    out_itemsize = jnp.dtype(out_dtype).itemsize
    in_bytes = sum(x.size * x.dtype.itemsize for x in selected)
    out_bytes = total * out_itemsize

    # Lane width: largest multiple of 128 that exactly divides the element count,
    # so reshape is free (no pad, no output slice) and stores are lane-dense.
    lane_w = next((lw for lw in _LANE_WIDTH_CANDIDATES if total % lw == 0), None)

    if lane_w is None or out_bytes < min_kernel_bytes:
        # Tiny tensors / no 128-factor: XLA fuses the adds into one elementwise
        # kernel with no extra copies; a pallas_call would only add overhead.
        return functools.reduce(operator.add, selected).astype(out_dtype)

    rows = total // lane_w
    acc_dtype = jnp.int32 if jnp.issubdtype(out_dtype, jnp.integer) else jnp.float32

    # --- tile-row selection ---------------------------------------------------
    # Target ~2 MiB per input tile, capped so the full resident footprint
    # (n_sel inputs + 1 output, each double-buffered) fits a per-generation
    # VMEM budget; keep >=2 grid steps when possible so "parallel" can shard
    # across v7x's 2 TensorCores.
    physical_vmem = _physical_vmem_bytes()
    vmem_budget = min(physical_vmem // 2, 40 * 1024 * 1024)
    bytes_per_row = lane_w * (sum(x.dtype.itemsize for x in selected) + out_itemsize)

    tr_target = max(_SUBLANE,
                    (_TILE_TARGET_BYTES // (lane_w * out_itemsize)) // _SUBLANE * _SUBLANE)
    tr_budget = max(_SUBLANE,
                    (vmem_budget // (2 * bytes_per_row)) // _SUBLANE * _SUBLANE)

    if rows < _SUBLANE:
        tr = rows                               # single full-extent block (valid: equals full dim)
    else:
        tr = min(tr_target, tr_budget)
        if rows >= 2 * _SUBLANE:
            # ensure at least 2 grid steps for v7x megacore sharding
            tr = min(tr, _round_up(pl.cdiv(rows, 2), _SUBLANE))
        if tr > rows:
            tr = rows                           # full extent (valid even if rows % 8 != 0)

    grid = (pl.cdiv(rows, tr),)

    # Free reshapes: lane_w divides total, so no pad and no trailing copy.
    flats = [x.reshape(rows, lane_w) for x in selected]

    resident_bytes = 2 * tr * bytes_per_row     # double-buffered input + output tiles
    vmem_limit = int(min(max(resident_bytes + (4 << 20), 16 << 20), physical_vmem))

    out = pl.pallas_call(
        _make_sum_kernel(n_sel, acc_dtype),
        out_shape=jax.ShapeDtypeStruct((rows, lane_w), out_dtype),
        grid=grid,
        in_specs=[
            pl.BlockSpec((tr, lane_w), lambda r: (r, 0)) for _ in range(n_sel)
        ],
        out_specs=pl.BlockSpec((tr, lane_w), lambda r: (r, 0)),
        compiler_params=pltpu.CompilerParams(
            # Row-tile axis is independent -> shard across TensorCores on v7x.
            dimension_semantics=("parallel",),
            vmem_limit_bytes=vmem_limit,
        ),
        cost_estimate=pl.CostEstimate(
            flops=(n_sel - 1) * total,
            transcendentals=0,
            bytes_accessed=in_bytes + out_bytes,
        ),
    )(*flats)

    return out.reshape(orig_shape)


if __name__ == "__main__":
    key = jax.random.PRNGKey(0)
    n_candidates = 4
    B, C, H, W = 2, 4, 16, 16
    keys = jax.random.split(key, 2 * n_candidates)
    input_tensors = [
        jax.random.normal(k, (B, C, H, W), dtype=jnp.float32) for k in keys[:n_candidates]
    ]

    # Case 1: list-sampled, tiny tensors -> plain fused-add fallback (no kernel launch).
    out_small = path_sampling_input_choice(input_tensors, [0, 2])
    jax.block_until_ready(out_small)
    assert jnp.allclose(out_small, input_tensors[0] + input_tensors[2], atol=1e-6), \
        "small fallback mismatch"

    # Case 2: same tensors, forced through the Pallas kernel path.
    out_kernel = path_sampling_input_choice(input_tensors, [0, 2], min_kernel_bytes=0)
    jax.block_until_ready(out_kernel)
    assert jnp.allclose(out_kernel, input_tensors[0] + input_tensors[2], atol=1e-6), \
        "kernel (2-input) mismatch"

    # Case 3: three selected candidates on a larger slab -> multi-step-grid kernel path.
    big_tensors = [
        jax.random.normal(k, (2, 8, 64, 64), dtype=jnp.float32) for k in keys[n_candidates:]
    ]
    out_big = path_sampling_input_choice(big_tensors, [0, 1, 3])
    jax.block_until_ready(out_big)
    ref_big = big_tensors[0] + big_tensors[1] + big_tensors[3]
    assert jnp.allclose(out_big, ref_big, atol=1e-5), "kernel (3-input) mismatch"

    # Case 4: integer inputs accumulate in int32 inside the kernel.
    int_tensors = [
        jnp.full((B, C, H, W), i + 1, dtype=jnp.int32) for i in range(n_candidates)
    ]
    out_int = path_sampling_input_choice(int_tensors, [1, 2, 3], min_kernel_bytes=0)
    jax.block_until_ready(out_int)
    assert jnp.array_equal(out_int, int_tensors[1] + int_tensors[2] + int_tensors[3]), \
        "int-sum mismatch"

    # Case 5: sampled is an int -> pass through that candidate (no kernel launch).
    out_one = path_sampling_input_choice(input_tensors, 3)
    jax.block_until_ready(out_one)
    assert jnp.allclose(out_one, input_tensors[3], atol=1e-6), "int-sampled mismatch"

    # Multi-hot mask helper kept for API parity with the torch module.
    mask = _get_mask([0, 2], n_candidates)
    assert bool(mask[0]) and bool(mask[2]) and not bool(mask[1]) and not bool(mask[3]), \
        "mask mismatch"

    print("KERNEL_OK")
</pallas_src>

<mosaic_0001>
module attributes {stable_mosaic.version = 11 : i64} {
  func.func @kernel(%arg0: i32, %arg1: memref<1x2048xf32, #tpu.memory_space<vmem>>, %arg2: memref<1x2048xf32, #tpu.memory_space<vmem>>, %arg3: memref<1x2048xf32, #tpu.memory_space<vmem>>) attributes {dimension_semantics = [#tpu.dimension_semantics<parallel>], iteration_bounds = array<i64: 1>, scalar_prefetch = 0 : i64, scratch_operands = 0 : i64, tpu.core_type = #tpu.core_type<tc>, window_params = [{transform_indices = @transform_0, window_bounds = array<i64: 1, 2048>}, {transform_indices = @transform_1, window_bounds = array<i64: 1, 2048>}, {transform_indices = @transform_2, window_bounds = array<i64: 1, 2048>}]} {
    %c0 = arith.constant 0 : index
    %c0_0 = arith.constant 0 : index
    %0 = vector.load %arg1[%c0, %c0_0] : memref<1x2048xf32, #tpu.memory_space<vmem>>, vector<1x2048xf32>
    %c0_1 = arith.constant 0 : index
    %c0_2 = arith.constant 0 : index
    %1 = vector.load %arg2[%c0_1, %c0_2] : memref<1x2048xf32, #tpu.memory_space<vmem>>, vector<1x2048xf32>
    %2 = arith.addf %0, %1 : vector<1x2048xf32>
    %c0_3 = arith.constant 0 : index
    %c0_4 = arith.constant 0 : index
    %3 = vector.load %arg3[%c0_3, %c0_4] : memref<1x2048xf32, #tpu.memory_space<vmem>>, vector<1x2048xf32>
    tpu.vector_store %arg3[%c0_3, %c0_4], %2 {strides = array<i32>} : memref<1x2048xf32, #tpu.memory_space<vmem>>, vector<1x2048xf32>,
    return
  }
  func.func @transform_0(%arg0: i32) -> (i32, i32) {
    %c0_i32 = arith.constant 0 : i32
    %c0_i32_0 = arith.constant 0 : i32
    return %arg0, %c0_i32 : i32, i32
  }
  func.func @transform_1(%arg0: i32) -> (i32, i32) {
    %c0_i32 = arith.constant 0 : i32
    %c0_i32_0 = arith.constant 0 : i32
    return %arg0, %c0_i32 : i32, i32
  }
  func.func @transform_2(%arg0: i32) -> (i32, i32) {
    %c0_i32 = arith.constant 0 : i32
    %c0_i32_0 = arith.constant 0 : i32
    return %arg0, %c0_i32 : i32, i32
  }
}

</mosaic_0001>

<bundles_post_ra>
// kernel: tpu_custom_call.1
= control target key start
LH: loop header
LB: loop body
LE: loop exit
PB: predicated region body
PF: predicated region fallthrough
CT: control target
= control target key end

     0   :  { %7 = vsyncpa [#allocation3], 0  ;;  %s174_s0 = inlined_call_operand.hbm [shape: f32[1,2048], index: 0, kind: input, shape index: {}]   ;;  %s175_s1 = inlined_call_operand.hbm [shape: f32[1,2048], index: 1, kind: input, shape index: {}]   ;;  %s176_s2 = inlined_call_operand.hbm [shape: f32[1,2048], index: 2, kind: output, shape index: {}]  }
   0x1   :  { %8 = vsyncpa [#allocation6], 0 }
   0x2   :  { %9 = vsyncpa [#allocation4], 0  ;;  %s15_s11 = sshll.u32 %s174_s0, 4  ;;  %s147_s12 = smov [#allocation2]   ;;  %s16_s11 = int_to_ptr.hbm [resolvable:$true] %s15_s11 }
   0x3   :  { %s17_s13 = sshll.u32 %s147_s12, 4  ;;  %s26_s16 = sshll.u32 %s175_s1, 4  ;;  %s18_s13 = int_to_ptr.vmem [resolvable:$true] %s17_s13  ;;  %s27_s16 = int_to_ptr.hbm [resolvable:$true] %s26_s16 }
   0x4   :  { %20 = dma.hbm_to_vmem [thread:$0]  %s16_s11, 256, %s18_s13, [#allocation3]  }
   0x5   :  { %s148_s17 = smov [#allocation5]  }
   0x6   :  { %s28_s18 = sshll.u32 %s148_s17, 4  ;;  %s29_s18 = int_to_ptr.vmem [resolvable:$true] %s28_s18 }
   0x7   :  { %31 = dma.hbm_to_vmem [thread:$0]  %s27_s16, 256, %s29_s18, [#allocation6]  }
   0x8   :  { %141 = dma.done.wait [#allocation3], 256  }
   0x9   :  { %142 = vsyncadd [#allocation3], 4294967040 }
   0xa   :  { %143 = dma.done.wait [#allocation6], 256  }
   0xb   :  { %144 = vsyncadd [#allocation6], 4294967040  ;;  %s149_s19 = smov [#allocation7]   ;;  %s55_s22 = sshll.u32 %s176_s2, 4  ;;  %v40_v0 = vld [vmem:[#allocation2] sm:$0xff]  ;;  %v42_v1 = vld [vmem:[#allocation5] sm:$0xff]  ;;  %s56_s22 = int_to_ptr.hbm [resolvable:$true] %s55_s22 }
   0xc   :  { %s53_s0 = sshll.u32 %s149_s19, 4  ;;  %v41_v2 = vld [vmem:[#allocation2 + $0x8] sm:$0xff]  ;;  %v44_v3 = vadd.f32 %v42_v1, %v40_v0  ;;  %v43_v4 = vld [vmem:[#allocation5 + $0x8] sm:$0xff]  ;;  %s54_s0 = int_to_ptr.vmem [resolvable:$true] %s53_s0 }
   0xd   :  { %v45_v5 = vadd.f32 %v43_v4, %v41_v2 }
   0xe   :  { %46 = vst [vmem:[#allocation7] sm:$0xff] %v44_v3 }
   0xf   :  { %47 = vst [vmem:[#allocation7 + $0x8] sm:$0xff] %v45_v5 }
  0x10   :  { %58 = dma.vmem_to_hbm [thread:$0]  %s54_s0, 256, %s56_s22, [#allocation4]  }
  0x11   :  { %145 = dma.done.wait [#allocation4], 256  }
  0x12   :  { %146 = vsyncadd [#allocation4], 4294967040 }
  0x13   :  { %63 = vsyncpa [#allocation3], 1 }
  0x14   :  { %64 = vsyncpa [#allocation6], 1 }
  0x15   :  { %65 = vsyncpa [#allocation4], 1 }

</bundles_post_ra>
